<compile_context>
chip_gen: v7x
topology: tpu7x:2x2x1
jax: 0.10.0
libtpu: 0.0.40
codegen_flags: <defaults>
</compile_context>

<pallas_src>
import jax
import jax.numpy as jnp
from jax.experimental import pallas as pl
from jax.experimental.pallas import tpu as pltpu

STATE_NUMBER = 3      # gym Pendulum-v1 observation_space.shape[0]
HIDDEN = 100
OUT = 1

H_PAD = 128           # hidden padded to one full vreg of lanes (done once)
SUBLANE = 8
MAX_TB = 1024         # max batch rows per grid step (VMEM-safe on v5e..v7x)


def _round_up(x, m):
    return (x + m - 1) // m * m


def _critic_kernel(x_ref, w1_ref, b1_ref, w2_ref, b2_ref, o_ref):
    # x_ref:(TB,3)  w1_ref:(3,H_PAD)  b1_ref:(1,H_PAD)  w2_ref:(1,H_PAD)
    # b2_ref:(1,1)  o_ref:(TB,1)
    x = x_ref[...]
    # fc1: h = x @ W1 + b1, unrolled over the 3 input features as VPU FMAs.
    h = b1_ref[...]                                   # (1, H_PAD), broadcasts
    for k in range(STATE_NUMBER):
        h = h + x[:, k:k + 1] * w1_ref[k:k + 1, :]    # (TB, H_PAD)
    h = jnp.maximum(h, 0.0)                           # ReLU
    # fc2: q = relu(h) @ w2 + b2 as a lane reduction (single output column).
    # Padded hidden lanes are zero in b1/w1/w2, so they contribute nothing.
    q = jnp.sum(h * w2_ref[...], axis=-1, keepdims=True) + b2_ref[...]
    o_ref[...] = q                                    # (TB, 1)


def prepare_params(w1, b1, w2, b2):
    """One-time padding of the (in,out)-layout params to 128 hidden lanes."""
    w1_p = jnp.zeros((STATE_NUMBER, H_PAD), jnp.float32).at[:, :HIDDEN].set(w1)
    b1_p = jnp.zeros((1, H_PAD), jnp.float32).at[0, :HIDDEN].set(b1)
    w2_p = jnp.zeros((1, H_PAD), jnp.float32).at[0, :HIDDEN].set(w2[:, 0])
    b2_p = jnp.asarray(b2, jnp.float32).reshape(1, OUT)
    return w1_p, b1_p, w2_p, b2_p


@jax.jit
def critic_forward(state, w1_p, b1_p, w2_p, b2_p):
    """state: (B, STATE_NUMBER) f32; padded params from prepare_params -> (B, 1)."""
    B = state.shape[0]
    tb = min(MAX_TB, _round_up(B, SUBLANE))           # batch tile (multiple of 8)
    bp = _round_up(B, tb)
    if bp != B:                                       # pad only the batch dim
        state = jnp.pad(state, ((0, bp - B), (0, 0)))
    n_tiles = bp // tb

    weight_bytes = 4 * (w1_p.size + b1_p.size + w2_p.size + b2_p.size)
    cost = pl.CostEstimate(
        flops=2 * bp * HIDDEN * (STATE_NUMBER + 1),
        transcendentals=0,
        bytes_accessed=4 * bp * (STATE_NUMBER + OUT) + weight_bytes,
    )

    out = pl.pallas_call(
        _critic_kernel,
        out_shape=jax.ShapeDtypeStruct((bp, OUT), jnp.float32),
        grid=(n_tiles,),
        in_specs=[
            pl.BlockSpec((tb, STATE_NUMBER), lambda i: (i, 0)),      # x tile
            pl.BlockSpec((STATE_NUMBER, H_PAD), lambda i: (0, 0)),   # W1 (resident)
            pl.BlockSpec((1, H_PAD), lambda i: (0, 0)),              # b1 (resident)
            pl.BlockSpec((1, H_PAD), lambda i: (0, 0)),              # w2 row (resident)
            pl.BlockSpec((1, OUT), lambda i: (0, 0)),                # b2 (resident)
        ],
        out_specs=pl.BlockSpec((tb, OUT), lambda i: (i, 0)),
        compiler_params=pltpu.CompilerParams(
            dimension_semantics=("parallel",)),
        cost_estimate=cost,
    )(state, w1_p, b1_p, w2_p, b2_p)

    return out[:B]


def init_params(key):
    """Mirror the PyTorch init: weights ~ N(0, 0.1), biases ~ default
    U(-1/sqrt(fan_in), 1/sqrt(fan_in)). Weights stored (in_features, out_features)."""
    k1, k2, k3, k4 = jax.random.split(key, 4)
    w1 = 0.1 * jax.random.normal(k1, (STATE_NUMBER, HIDDEN), jnp.float32)
    w2 = 0.1 * jax.random.normal(k2, (HIDDEN, OUT), jnp.float32)
    bnd1 = 1.0 / jnp.sqrt(jnp.float32(STATE_NUMBER))
    bnd2 = 1.0 / jnp.sqrt(jnp.float32(HIDDEN))
    b1 = jax.random.uniform(k3, (HIDDEN,), jnp.float32, -bnd1, bnd1)
    b2 = jax.random.uniform(k4, (OUT,), jnp.float32, -bnd2, bnd2)
    return w1, b1, w2, b2


if __name__ == "__main__":
    key = jax.random.PRNGKey(0)
    pkey, xkey = jax.random.split(key)
    w1, b1, w2, b2 = init_params(pkey)
    params = prepare_params(w1, b1, w2, b2)   # one-time padding, outside the forward path

    def reference(x):
        return jnp.maximum(x @ w1 + b1, 0.0) @ w2 + b2

    # primary check: small batch, state dim 3 (as in the PPO critic)
    batch = 2
    state = jax.random.normal(xkey, (batch, STATE_NUMBER), jnp.float32)
    q = jax.block_until_ready(critic_forward(state, *params))
    assert q.shape == (batch, 1)
    assert jnp.allclose(q, reference(state), atol=1e-5, rtol=1e-5)

    # secondary check: batch not a multiple of 8, exercises the pad + slice path
    state2 = jax.random.normal(jax.random.PRNGKey(1), (37, STATE_NUMBER), jnp.float32)
    q2 = jax.block_until_ready(critic_forward(state2, *params))
    assert q2.shape == (37, 1)
    assert jnp.allclose(q2, reference(state2), atol=1e-5, rtol=1e-5)

    print("KERNEL_OK")
</pallas_src>

<mosaic_0001>
module attributes {stable_mosaic.version = 11 : i64} {
  func.func @_critic_kernel(%arg0: i32, %arg1: memref<8x3xf32, #tpu.memory_space<vmem>>, %arg2: memref<3x128xf32, #tpu.memory_space<vmem>>, %arg3: memref<1x128xf32, #tpu.memory_space<vmem>>, %arg4: memref<1x128xf32, #tpu.memory_space<vmem>>, %arg5: memref<1x1xf32, #tpu.memory_space<vmem>>, %arg6: memref<8x1xf32, #tpu.memory_space<vmem>>) attributes {dimension_semantics = [#tpu.dimension_semantics<parallel>], iteration_bounds = array<i64: 1>, scalar_prefetch = 0 : i64, scratch_operands = 0 : i64, tpu.core_type = #tpu.core_type<tc>, window_params = [{transform_indices = @transform_0, window_bounds = array<i64: 8, 3>}, {pipeline_mode = #tpu.pipeline_mode<synchronous>, transform_indices = @transform_1, window_bounds = array<i64: 3, 128>}, {pipeline_mode = #tpu.pipeline_mode<synchronous>, transform_indices = @transform_2, window_bounds = array<i64: 1, 128>}, {pipeline_mode = #tpu.pipeline_mode<synchronous>, transform_indices = @transform_3, window_bounds = array<i64: 1, 128>}, {pipeline_mode = #tpu.pipeline_mode<synchronous>, transform_indices = @transform_4, window_bounds = array<i64: 1, 1>}, {transform_indices = @transform_5, window_bounds = array<i64: 8, 1>}]} {
    %c0 = arith.constant 0 : index
    %c0_0 = arith.constant 0 : index
    %0 = vector.load %arg1[%c0, %c0_0] : memref<8x3xf32, #tpu.memory_space<vmem>>, vector<8x3xf32>
    %c0_1 = arith.constant 0 : index
    %c0_2 = arith.constant 0 : index
    %1 = vector.load %arg3[%c0_1, %c0_2] : memref<1x128xf32, #tpu.memory_space<vmem>>, vector<1x128xf32>
    %2 = vector.extract_strided_slice %0 {offsets = [0, 0], sizes = [8, 1], strides = [1, 1]} : vector<8x3xf32> to vector<8x1xf32>
    %c0_3 = arith.constant 0 : index
    %c0_4 = arith.constant 0 : index
    %3 = vector.load %arg2[%c0_3, %c0_4] : memref<3x128xf32, #tpu.memory_space<vmem>>, vector<1x128xf32>
    %4 = vector.broadcast %2 : vector<8x1xf32> to vector<8x128xf32>
    %5 = vector.broadcast %3 : vector<1x128xf32> to vector<8x128xf32>
    %6 = arith.mulf %4, %5 : vector<8x128xf32>
    %7 = vector.broadcast %1 : vector<1x128xf32> to vector<8x128xf32>
    %8 = arith.addf %7, %6 : vector<8x128xf32>
    %9 = vector.extract_strided_slice %0 {offsets = [0, 1], sizes = [8, 1], strides = [1, 1]} : vector<8x3xf32> to vector<8x1xf32>
    %c1 = arith.constant 1 : index
    %c0_5 = arith.constant 0 : index
    %10 = vector.load %arg2[%c1, %c0_5] : memref<3x128xf32, #tpu.memory_space<vmem>>, vector<1x128xf32>
    %11 = vector.broadcast %9 : vector<8x1xf32> to vector<8x128xf32>
    %12 = vector.broadcast %10 : vector<1x128xf32> to vector<8x128xf32>
    %13 = arith.mulf %11, %12 : vector<8x128xf32>
    %14 = arith.addf %8, %13 : vector<8x128xf32>
    %15 = vector.extract_strided_slice %0 {offsets = [0, 2], sizes = [8, 1], strides = [1, 1]} : vector<8x3xf32> to vector<8x1xf32>
    %c2 = arith.constant 2 : index
    %c0_6 = arith.constant 0 : index
    %16 = vector.load %arg2[%c2, %c0_6] : memref<3x128xf32, #tpu.memory_space<vmem>>, vector<1x128xf32>
    %17 = vector.broadcast %15 : vector<8x1xf32> to vector<8x128xf32>
    %18 = vector.broadcast %16 : vector<1x128xf32> to vector<8x128xf32>
    %19 = arith.mulf %17, %18 : vector<8x128xf32>
    %20 = arith.addf %14, %19 : vector<8x128xf32>
    %cst = arith.constant 0.000000e+00 : f32
    %21 = vector.broadcast %cst : f32 to vector<8x128xf32>
    %22 = arith.maximumf %20, %21 : vector<8x128xf32>
    %c0_7 = arith.constant 0 : index
    %c0_8 = arith.constant 0 : index
    %23 = vector.load %arg4[%c0_7, %c0_8] : memref<1x128xf32, #tpu.memory_space<vmem>>, vector<1x128xf32>
    %24 = vector.broadcast %23 : vector<1x128xf32> to vector<8x128xf32>
    %25 = arith.mulf %22, %24 : vector<8x128xf32>
    %cst_9 = arith.constant dense<0.000000e+00> : vector<8xf32>
    %26 = vector.multi_reduction <add>, %25, %cst_9 [1] : vector<8x128xf32> to vector<8xf32>
    %27 = vector.shape_cast %26 : vector<8xf32> to vector<8x1xf32>
    %c0_10 = arith.constant 0 : index
    %c0_11 = arith.constant 0 : index
    %28 = vector.load %arg5[%c0_10, %c0_11] : memref<1x1xf32, #tpu.memory_space<vmem>>, vector<1x1xf32>
    %29 = vector.broadcast %28 : vector<1x1xf32> to vector<8x1xf32>
    %30 = arith.addf %27, %29 : vector<8x1xf32>
    %c0_12 = arith.constant 0 : index
    %c0_13 = arith.constant 0 : index
    %31 = vector.load %arg6[%c0_12, %c0_13] : memref<8x1xf32, #tpu.memory_space<vmem>>, vector<8x1xf32>
    tpu.vector_store %arg6[%c0_12, %c0_13], %30 {strides = array<i32>} : memref<8x1xf32, #tpu.memory_space<vmem>>, vector<8x1xf32>,
    return
  }
  func.func @transform_0(%arg0: i32) -> (i32, i32) {
    %c0_i32 = arith.constant 0 : i32
    %c0_i32_0 = arith.constant 0 : i32
    return %arg0, %c0_i32 : i32, i32
  }
  func.func @transform_1(%arg0: i32) -> (i32, i32) {
    %c0_i32 = arith.constant 0 : i32
    %c0_i32_0 = arith.constant 0 : i32
    %c0_i32_1 = arith.constant 0 : i32
    return %c0_i32, %c0_i32_0 : i32, i32
  }
  func.func @transform_2(%arg0: i32) -> (i32, i32) {
    %c0_i32 = arith.constant 0 : i32
    %c0_i32_0 = arith.constant 0 : i32
    %c0_i32_1 = arith.constant 0 : i32
    return %c0_i32, %c0_i32_0 : i32, i32
  }
  func.func @transform_3(%arg0: i32) -> (i32, i32) {
    %c0_i32 = arith.constant 0 : i32
    %c0_i32_0 = arith.constant 0 : i32
    %c0_i32_1 = arith.constant 0 : i32
    return %c0_i32, %c0_i32_0 : i32, i32
  }
  func.func @transform_4(%arg0: i32) -> (i32, i32) {
    %c0_i32 = arith.constant 0 : i32
    %c0_i32_0 = arith.constant 0 : i32
    %c0_i32_1 = arith.constant 0 : i32
    return %c0_i32, %c0_i32_0 : i32, i32
  }
  func.func @transform_5(%arg0: i32) -> (i32, i32) {
    %c0_i32 = arith.constant 0 : i32
    %c0_i32_0 = arith.constant 0 : i32
    return %arg0, %c0_i32 : i32, i32
  }
}

</mosaic_0001>

<bundles_post_ra>
// kernel: critic_forward.1
= control target key start
LH: loop header
LB: loop body
LE: loop exit
PB: predicated region body
PF: predicated region fallthrough
CT: control target
= control target key end

     0   :  { %v102_v0 = vmov 0   ;;  %v103_v2 = vmov 2   ;;  %v104_v3 = vmov 1   ;;  %vm83_vm0 = vcmask 7168   ;;  %s159_s0 = inlined_call_operand.vmem [shape: f32[8,3], index: 0, kind: input, shape index: {}]   ;;  %s160_s4 = inlined_call_operand.<no memory space> [shape: f32[1,1], index: 4, kind: input, shape index: {}]   ;;  %s161_s1 = inlined_call_operand.vmem [shape: f32[3,128], index: 1, kind: input, shape index: {}]   ;;  %s162_s2 = inlined_call_operand.vmem [shape: f32[1,128], index: 2, kind: input, shape index: {}]   ;;  %s163_s3 = inlined_call_operand.vmem [shape: f32[1,128], index: 3, kind: input, shape index: {}]   ;;  %s164_s5 = inlined_call_operand.vmem [shape: f32[8,1], index: 5, kind: output, shape index: {}]  }
   0x1   :  { %98 = vset.pattern.permute.xlu0 %v102_v0  ;;  %v22_v1 = vld [vmem:[%s159_s0] sm:$0xff]  ;;  %100 = vset.pattern.permute.xlu1 %v103_v2  ;;  %v10_v4 = vstv %s160_s4 }
   0x2   :  { %27 = vperm.xlu0 %98, %v22_v1   ;;  %55 = vperm.xlu1 %100, %v22_v1   ;;  %11 = vst [vmem:[#allocation2] sm:$0x1] %v10_v4  ;;  %v89_v5 = vld [vmem:[%s161_s1] ss:$0 sm:$0xff]  ;;  %v91_v9 = vld [vmem:[%s161_s1 + $0x1] ss:$0 sm:$0xff] }
   0x3   :  { %v90_v8 = vld [vmem:[%s162_s2] ss:$0 sm:$0xff]  ;;  %v92_v10 = vld [vmem:[%s161_s1 + $0x2] ss:$0 sm:$0xff] }
   0x4   :  { %v93_v18 = vld [vmem:[%s163_s3] ss:$0 sm:$0xff] }
   0x6   :  { %99 = vset.pattern.permute.xlu0 %v104_v3 }
   0x7   :  { %44 = vperm.xlu0 %99, %v22_v1  }
   0x9   :  { %v94_v21 = vld [vmem:[#allocation2] ss:$0 sm:$0xff] }
   0xb   :  { %101 = vset.pattern.permute.xlu0 %v103_v2 }
  0x81   :  { %v28_v6 = vpop.permute.xlu0 %27  ;;  %v56_v11 = vpop.permute.xlu1 %55 }
  0x82   :  { %v34_v7 = vmul.f32 %v89_v5, %v28_v6  ;;  %v62_v15 = vmul.f32 %v92_v10, %v56_v11 }
  0x84   :  { %v41_v13 = vadd.f32 %v90_v8, %v34_v7 }
  0x86   :  { %v45_v12 = vpop.permute.xlu0 %44 }
  0x87   :  { %v51_v14 = vmul.f32 %v91_v9, %v45_v12 }
  0x89   :  { %v52_v16 = vadd.f32 %v51_v14, %v41_v13 }
  0x8b   :  { %v63_v17 = vadd.f32 %v62_v15, %v52_v16 }
  0x8d   :  { %v64_v19 = vmax.f32 %v63_v17, 0.0 }
  0x8f   :  { %v72_v20 = vmul.f32 %v93_v18, %v64_v19 }
  0x91   :  { %73 = vadd.xlane.f32.xlu1 %v72_v20 }
 0x11e   :  { %v74_v22 = vpop.xlane.xlu1 %73 }
 0x11f   :  { %v82_v23 = vadd.f32 %v94_v21, %v74_v22 }
 0x121   :  { %84 = vst.msk [vmem:[%s164_s5] sm:$0xff] %vm83_vm0, %v82_v23 }

</bundles_post_ra>
